<compile_context>
chip_gen: v6e
topology: v6e:2x2x1
jax: 0.10.0
libtpu: 0.0.40
codegen_flags: <defaults>
</compile_context>

<pallas_src>
import functools
import math

import jax
import jax.numpy as jnp
from jax.experimental import pallas as pl
from jax.experimental.pallas import tpu as pltpu


def _vmem_capacity_bytes():
    try:
        info = pltpu.get_tpu_info()
        return int(getattr(info, "vmem_capacity_bytes", 64 * 1024 * 1024))
    except Exception:
        return 64 * 1024 * 1024


_VMEM_CAP = _vmem_capacity_bytes()
if _VMEM_CAP >= 100 * 1024 * 1024:        # v5e / v6e: 128 MiB physical VMEM
    _TILE_BUDGET = 24 * 1024 * 1024
    _VMEM_LIMIT = 64 * 1024 * 1024
else:                                     # v7x: 64 MiB physical VMEM
    _TILE_BUDGET = 14 * 1024 * 1024
    _VMEM_LIMIT = 40 * 1024 * 1024


def _downsampler_kernel(te_ref, to_ref, me_ref, mo_ref, be_ref, bo_ref,
                        w_ref, bias_ref, out_ref, *, pw):
    """One (batch, pooled-row-tile) grid step.

    Each tap ref holds im2col patch rows, one row per pooled output pixel
    (row index = u*pw + w), shape (1, TPH*PW, K) bf16:
      te/to: conv row 2u-1 (top tap; the u==0 rows duplicate conv row 0), even/odd cols
      me/mo: conv row 2u   (center tap), even/odd cols
      be/bo: conv row 2u+1 (bottom tap), even/odd cols
    w_ref:    (K, CPAD)  bf16 weights with the BN scale folded in.
    bias_ref: (1, CPAD)  f32 folded BN bias.
    out_ref:  (1, TPH*PW, CPAD) bf16 pooled output (channels padded to 128 lanes).
    """
    n_pool = out_ref.shape[1]
    w = w_ref[...]
    b = bias_ref[...]

    def conv_bn_relu(ref):
        y = jnp.dot(ref[0], w, preferred_element_type=jnp.float32)
        return jnp.maximum(y + b, 0.0)                 # (TPH*PW, CPAD), values >= 0

    # Vertical 3-tap max over conv rows {2u-1, 2u, 2u+1}, per column parity.  One MXU
    # matmul per tap with the max fused keeps only ~2 f32 tiles live at a time.
    v_even = jnp.maximum(jnp.maximum(conv_bn_relu(te_ref), conv_bn_relu(be_ref)),
                         conv_bn_relu(me_ref))
    v_odd = jnp.maximum(jnp.maximum(conv_bn_relu(to_ref), conv_bn_relu(bo_ref)),
                        conv_bn_relu(mo_ref))

    # Horizontal 3-tap max over conv cols {2w-1, 2w, 2w+1}.  The 2w-1 tap is v_odd of
    # the previous pooled pixel (sublane roll on the XLU); at w == 0 it is the maxpool's
    # left padding -> substitute 0, exact because the other taps are post-ReLU (>= 0).
    left = pltpu.roll(v_odd, shift=1, axis=0)
    row_id = jax.lax.broadcasted_iota(jnp.int32, (n_pool, 1), 0)
    left = jnp.where(row_id % pw == 0, 0.0, left)

    out_ref[0] = jnp.maximum(jnp.maximum(v_even, v_odd), left).astype(out_ref.dtype)


def _pick_tph(ph, pw, kk, cpad, n_batch, budget_bytes):
    """Largest divisor of PH whose per-step VMEM footprint fits; prefer an even grid."""
    kk_pad = 128 * ((kk + 127) // 128)        # lane padding of the K dim in VMEM
    candidates = []
    for tph in range(1, ph + 1):
        if ph % tph:
            continue
        rows = tph * pw
        if tph != ph and rows % 8:
            continue                           # block sublane dim must be 8-aligned (or full)
        est = (6 * 2 * rows * kk_pad * 2       # six double-buffered bf16 input tiles
               + 2 * rows * cpad * 2           # double-buffered bf16 output tile
               + 2 * kk_pad * cpad * 2         # resident weights
               + 5 * rows * cpad * 4)          # in-kernel f32 matmul / pooling temporaries
        if est <= budget_bytes:
            candidates.append(tph)
    if not candidates:
        return 1
    # Prefer an even total number of grid steps (balances v7x's two TensorCores), then
    # the largest tile (fewer grid steps, bigger DMA bursts).
    return max(candidates, key=lambda t: ((n_batch * (ph // t)) % 2 == 0, t))


@jax.jit
def downsampler_forward(x, conv_weight, bn_gamma, bn_beta, bn_mean, bn_var, eps=1e-5):
    """x: (N, Cin, H, W) NCHW, conv_weight: (Cout, Cin, 7, 7). Returns (N, Cout, H//4, W//4)."""
    n, cin, h, w_in = x.shape
    cout = conv_weight.shape[0]
    assert h % 4 == 0 and w_in % 4 == 0, "Downsampler kernel assumes H, W divisible by 4"

    oh, ow = h // 2, w_in // 2            # conv: k7, s2, p3
    ph, pw = oh // 2, ow // 2             # pool: k3, s2, p1
    kk = cin * 49
    cpad = 128 * ((cout + 127) // 128)    # lane-dense channel dim

    # ---- im2col in bf16, built in one pass per maxpool tap ------------------------
    # NHWC + pad-3 so every patch is a step-4 strided slice (conv stride 2 * pool
    # stride 2) and the 49-tap stack lands at the end of K (no big-array transpose).
    xb = jnp.transpose(x, (0, 2, 3, 1)).astype(jnp.bfloat16)    # (N, H, W, Cin)
    xp = jnp.pad(xb, ((0, 0), (3, 3), (3, 3), (0, 0)))          # (N, H+6, W+6, Cin)

    def patches(row0, nrows, col0):
        # (N, nrows*pw, K) patch rows: element [n, r*pw + c, ci*49 + dh*7 + dw]
        #   = xp[n, row0 + 4r + dh, col0 + 4c + dw, ci]
        slabs = [xp[:, row0 + dh:row0 + dh + 4 * (nrows - 1) + 1:4,
                       col0 + dw:col0 + dw + 4 * (pw - 1) + 1:4, :]
                 for dh in range(7) for dw in range(7)]
        return jnp.stack(slabs, axis=-1).reshape(n, nrows * pw, kk)

    m_e = patches(0, ph, 0)               # center tap: conv row 2u,   even cols 2w
    m_o = patches(0, ph, 2)               # center tap: conv row 2u,   odd  cols 2w+1
    b_e = patches(2, ph, 0)               # bottom tap: conv row 2u+1, even cols
    b_o = patches(2, ph, 2)               # bottom tap: conv row 2u+1, odd  cols
    if ph > 1:                            # top tap: conv row 2u-1; u == 0 duplicates row 0
        t_e = jnp.concatenate([patches(0, 1, 0), patches(2, ph - 1, 0)], axis=1)
        t_o = jnp.concatenate([patches(0, 1, 2), patches(2, ph - 1, 2)], axis=1)
    else:
        t_e, t_o = patches(0, 1, 0), patches(0, 1, 2)

    # ---- fold BN (eval mode) into the weights / a single bias; pad Cout -> 128 lanes -
    inv_std = 1.0 / jnp.sqrt(bn_var + eps)
    scale = bn_gamma * inv_std
    bias = bn_beta - bn_mean * scale
    w2d = conv_weight.reshape(cout, kk).T * scale[None, :]      # (K, Cout)
    w_pad = jnp.zeros((kk, cpad), jnp.float32).at[:, :cout].set(w2d).astype(jnp.bfloat16)
    b_pad = jnp.zeros((1, cpad), jnp.float32).at[0, :cout].set(bias)

    tph = _pick_tph(ph, pw, kk, cpad, n, _TILE_BUDGET)
    ntiles = ph // tph
    n_pool = tph * pw

    tap_spec = pl.BlockSpec((1, n_pool, kk), lambda b_, t: (b_, t, 0))
    flops = 2 * 6 * n * ph * pw * kk * cpad
    bytes_accessed = (6 * n * ph * pw * kk * 2 + kk * cpad * 2 + cpad * 4
                      + n * ph * pw * cpad * 2)

    out = pl.pallas_call(
        functools.partial(_downsampler_kernel, pw=pw),
        out_shape=jax.ShapeDtypeStruct((n, ph * pw, cpad), jnp.bfloat16),
        grid=(n, ntiles),
        in_specs=[tap_spec] * 6 + [
            pl.BlockSpec((kk, cpad), lambda b_, t: (0, 0)),     # resident weights
            pl.BlockSpec((1, cpad), lambda b_, t: (0, 0)),      # resident bias
        ],
        out_specs=pl.BlockSpec((1, n_pool, cpad), lambda b_, t: (b_, t, 0)),
        compiler_params=pltpu.CompilerParams(
            dimension_semantics=("parallel", "parallel"),
            vmem_limit_bytes=_VMEM_LIMIT,
        ),
        cost_estimate=pl.CostEstimate(flops=flops, transcendentals=0,
                                      bytes_accessed=bytes_accessed),
    )(t_e, t_o, m_e, m_o, b_e, b_o, w_pad, b_pad)

    out = out[..., :cout].reshape(n, ph, pw, cout)               # drop channel padding
    return jnp.transpose(out, (0, 3, 1, 2)).astype(jnp.float32)  # back to NCHW, f32


def _reference(x, conv_weight, bn_gamma, bn_beta, bn_mean, bn_var, eps=1e-5):
    y = jax.lax.conv_general_dilated(
        x, conv_weight, window_strides=(2, 2), padding=((3, 3), (3, 3)),
        dimension_numbers=("NCHW", "OIHW", "NCHW"))
    inv_std = 1.0 / jnp.sqrt(bn_var + eps)
    y = y * (bn_gamma * inv_std)[None, :, None, None] + \
        (bn_beta - bn_mean * bn_gamma * inv_std)[None, :, None, None]
    y = jnp.maximum(y, 0.0)
    y = jax.lax.reduce_window(
        y, -jnp.inf, jax.lax.max,
        window_dimensions=(1, 1, 3, 3), window_strides=(1, 1, 2, 2),
        padding=((0, 0), (0, 0), (1, 1), (1, 1)))
    return y


if __name__ == "__main__":
    # Small shapes: batch=2, num_chan=3, spatial=16, inplanes=8.
    N, CIN, H, W = 2, 3, 16, 16
    INPLANES = 8

    key = jax.random.PRNGKey(0)
    k_w, k_x = jax.random.split(key)

    # Deterministic init mirroring the module's __init__:
    #   conv weight ~ N(0, sqrt(2/n)), n = kh*kw*out_channels; BN weight=1, bias=0.
    fan = 7 * 7 * INPLANES
    conv_weight = jax.random.normal(k_w, (INPLANES, CIN, 7, 7), jnp.float32) * math.sqrt(2.0 / fan)
    bn_gamma = jnp.ones((INPLANES,), jnp.float32)
    bn_beta = jnp.zeros((INPLANES,), jnp.float32)
    bn_mean = jnp.zeros((INPLANES,), jnp.float32)
    bn_var = jnp.ones((INPLANES,), jnp.float32)

    x = jax.random.normal(k_x, (N, CIN, H, W), jnp.float32)

    out = downsampler_forward(x, conv_weight, bn_gamma, bn_beta, bn_mean, bn_var)
    out = jax.block_until_ready(out)

    ref = _reference(x, conv_weight, bn_gamma, bn_beta, bn_mean, bn_var)
    assert out.shape == (N, INPLANES, H // 4, W // 4), out.shape
    # bf16 matmul operands + bf16 pooled store -> loosened tolerance vs f32 reference.
    assert jnp.allclose(out, ref, atol=5e-2, rtol=5e-2), float(jnp.max(jnp.abs(out - ref)))

    print("KERNEL_OK")
</pallas_src>

<mosaic_0001>
module attributes {stable_mosaic.version = 11 : i64} {
  func.func @_downsampler_kernel(%arg0: i32, %arg1: i32, %arg2: memref<1x16x147xbf16, #tpu.memory_space<vmem>>, %arg3: memref<1x16x147xbf16, #tpu.memory_space<vmem>>, %arg4: memref<1x16x147xbf16, #tpu.memory_space<vmem>>, %arg5: memref<1x16x147xbf16, #tpu.memory_space<vmem>>, %arg6: memref<1x16x147xbf16, #tpu.memory_space<vmem>>, %arg7: memref<1x16x147xbf16, #tpu.memory_space<vmem>>, %arg8: memref<147x128xbf16, #tpu.memory_space<vmem>>, %arg9: memref<1x128xf32, #tpu.memory_space<vmem>>, %arg10: memref<1x16x128xbf16, #tpu.memory_space<vmem>>) attributes {dimension_semantics = [#tpu.dimension_semantics<parallel>, #tpu.dimension_semantics<parallel>], iteration_bounds = array<i64: 2, 1>, scalar_prefetch = 0 : i64, scratch_operands = 0 : i64, tpu.core_type = #tpu.core_type<tc>, window_params = [{transform_indices = @transform_0, window_bounds = array<i64: 1, 16, 147>}, {transform_indices = @transform_1, window_bounds = array<i64: 1, 16, 147>}, {transform_indices = @transform_2, window_bounds = array<i64: 1, 16, 147>}, {transform_indices = @transform_3, window_bounds = array<i64: 1, 16, 147>}, {transform_indices = @transform_4, window_bounds = array<i64: 1, 16, 147>}, {transform_indices = @transform_5, window_bounds = array<i64: 1, 16, 147>}, {pipeline_mode = #tpu.pipeline_mode<synchronous>, transform_indices = @transform_6, window_bounds = array<i64: 147, 128>}, {pipeline_mode = #tpu.pipeline_mode<synchronous>, transform_indices = @transform_7, window_bounds = array<i64: 1, 128>}, {transform_indices = @transform_8, window_bounds = array<i64: 1, 16, 128>}]} {
    %c0 = arith.constant 0 : index
    %c0_0 = arith.constant 0 : index
    %0 = vector.load %arg8[%c0, %c0_0] : memref<147x128xbf16, #tpu.memory_space<vmem>>, vector<147x128xbf16>
    %c0_1 = arith.constant 0 : index
    %c0_2 = arith.constant 0 : index
    %1 = vector.load %arg9[%c0_1, %c0_2] : memref<1x128xf32, #tpu.memory_space<vmem>>, vector<1x128xf32>
    %c0_3 = arith.constant 0 : index
    %c0_4 = arith.constant 0 : index
    %c0_5 = arith.constant 0 : index
    %2 = vector.load %arg2[%c0_3, %c0_4, %c0_5] : memref<1x16x147xbf16, #tpu.memory_space<vmem>>, vector<1x16x147xbf16>
    %3 = vector.shape_cast %2 : vector<1x16x147xbf16> to vector<16x147xbf16>
    %cst = arith.constant dense<0.000000e+00> : vector<16x128xf32>
    %4 = tpu.matmul %3, %0, %cst {dimension_numbers = #tpu.dot_dimension_numbers<[1], [0], [0], [1], [0, 0, 1, 1], [], []>} : vector<16x147xbf16>, vector<147x128xbf16>, vector<16x128xf32> -> vector<16x128xf32>
    %5 = vector.broadcast %1 : vector<1x128xf32> to vector<16x128xf32>
    %6 = arith.addf %4, %5 : vector<16x128xf32>
    %cst_6 = arith.constant 0.000000e+00 : f32
    %7 = vector.broadcast %cst_6 : f32 to vector<16x128xf32>
    %8 = arith.maximumf %6, %7 : vector<16x128xf32>
    %c0_7 = arith.constant 0 : index
    %c0_8 = arith.constant 0 : index
    %c0_9 = arith.constant 0 : index
    %9 = vector.load %arg6[%c0_7, %c0_8, %c0_9] : memref<1x16x147xbf16, #tpu.memory_space<vmem>>, vector<1x16x147xbf16>
    %10 = vector.shape_cast %9 : vector<1x16x147xbf16> to vector<16x147xbf16>
    %cst_10 = arith.constant dense<0.000000e+00> : vector<16x128xf32>
    %11 = tpu.matmul %10, %0, %cst_10 {dimension_numbers = #tpu.dot_dimension_numbers<[1], [0], [0], [1], [0, 0, 1, 1], [], []>} : vector<16x147xbf16>, vector<147x128xbf16>, vector<16x128xf32> -> vector<16x128xf32>
    %12 = vector.broadcast %1 : vector<1x128xf32> to vector<16x128xf32>
    %13 = arith.addf %11, %12 : vector<16x128xf32>
    %cst_11 = arith.constant 0.000000e+00 : f32
    %14 = vector.broadcast %cst_11 : f32 to vector<16x128xf32>
    %15 = arith.maximumf %13, %14 : vector<16x128xf32>
    %16 = arith.maximumf %8, %15 : vector<16x128xf32>
    %c0_12 = arith.constant 0 : index
    %c0_13 = arith.constant 0 : index
    %c0_14 = arith.constant 0 : index
    %17 = vector.load %arg4[%c0_12, %c0_13, %c0_14] : memref<1x16x147xbf16, #tpu.memory_space<vmem>>, vector<1x16x147xbf16>
    %18 = vector.shape_cast %17 : vector<1x16x147xbf16> to vector<16x147xbf16>
    %cst_15 = arith.constant dense<0.000000e+00> : vector<16x128xf32>
    %19 = tpu.matmul %18, %0, %cst_15 {dimension_numbers = #tpu.dot_dimension_numbers<[1], [0], [0], [1], [0, 0, 1, 1], [], []>} : vector<16x147xbf16>, vector<147x128xbf16>, vector<16x128xf32> -> vector<16x128xf32>
    %20 = vector.broadcast %1 : vector<1x128xf32> to vector<16x128xf32>
    %21 = arith.addf %19, %20 : vector<16x128xf32>
    %cst_16 = arith.constant 0.000000e+00 : f32
    %22 = vector.broadcast %cst_16 : f32 to vector<16x128xf32>
    %23 = arith.maximumf %21, %22 : vector<16x128xf32>
    %24 = arith.maximumf %16, %23 : vector<16x128xf32>
    %c0_17 = arith.constant 0 : index
    %c0_18 = arith.constant 0 : index
    %c0_19 = arith.constant 0 : index
    %25 = vector.load %arg3[%c0_17, %c0_18, %c0_19] : memref<1x16x147xbf16, #tpu.memory_space<vmem>>, vector<1x16x147xbf16>
    %26 = vector.shape_cast %25 : vector<1x16x147xbf16> to vector<16x147xbf16>
    %cst_20 = arith.constant dense<0.000000e+00> : vector<16x128xf32>
    %27 = tpu.matmul %26, %0, %cst_20 {dimension_numbers = #tpu.dot_dimension_numbers<[1], [0], [0], [1], [0, 0, 1, 1], [], []>} : vector<16x147xbf16>, vector<147x128xbf16>, vector<16x128xf32> -> vector<16x128xf32>
    %28 = vector.broadcast %1 : vector<1x128xf32> to vector<16x128xf32>
    %29 = arith.addf %27, %28 : vector<16x128xf32>
    %cst_21 = arith.constant 0.000000e+00 : f32
    %30 = vector.broadcast %cst_21 : f32 to vector<16x128xf32>
    %31 = arith.maximumf %29, %30 : vector<16x128xf32>
    %c0_22 = arith.constant 0 : index
    %c0_23 = arith.constant 0 : index
    %c0_24 = arith.constant 0 : index
    %32 = vector.load %arg7[%c0_22, %c0_23, %c0_24] : memref<1x16x147xbf16, #tpu.memory_space<vmem>>, vector<1x16x147xbf16>
    %33 = vector.shape_cast %32 : vector<1x16x147xbf16> to vector<16x147xbf16>
    %cst_25 = arith.constant dense<0.000000e+00> : vector<16x128xf32>
    %34 = tpu.matmul %33, %0, %cst_25 {dimension_numbers = #tpu.dot_dimension_numbers<[1], [0], [0], [1], [0, 0, 1, 1], [], []>} : vector<16x147xbf16>, vector<147x128xbf16>, vector<16x128xf32> -> vector<16x128xf32>
    %35 = vector.broadcast %1 : vector<1x128xf32> to vector<16x128xf32>
    %36 = arith.addf %34, %35 : vector<16x128xf32>
    %cst_26 = arith.constant 0.000000e+00 : f32
    %37 = vector.broadcast %cst_26 : f32 to vector<16x128xf32>
    %38 = arith.maximumf %36, %37 : vector<16x128xf32>
    %39 = arith.maximumf %31, %38 : vector<16x128xf32>
    %c0_27 = arith.constant 0 : index
    %c0_28 = arith.constant 0 : index
    %c0_29 = arith.constant 0 : index
    %40 = vector.load %arg5[%c0_27, %c0_28, %c0_29] : memref<1x16x147xbf16, #tpu.memory_space<vmem>>, vector<1x16x147xbf16>
    %41 = vector.shape_cast %40 : vector<1x16x147xbf16> to vector<16x147xbf16>
    %cst_30 = arith.constant dense<0.000000e+00> : vector<16x128xf32>
    %42 = tpu.matmul %41, %0, %cst_30 {dimension_numbers = #tpu.dot_dimension_numbers<[1], [0], [0], [1], [0, 0, 1, 1], [], []>} : vector<16x147xbf16>, vector<147x128xbf16>, vector<16x128xf32> -> vector<16x128xf32>
    %43 = vector.broadcast %1 : vector<1x128xf32> to vector<16x128xf32>
    %44 = arith.addf %42, %43 : vector<16x128xf32>
    %cst_31 = arith.constant 0.000000e+00 : f32
    %45 = vector.broadcast %cst_31 : f32 to vector<16x128xf32>
    %46 = arith.maximumf %44, %45 : vector<16x128xf32>
    %47 = arith.maximumf %39, %46 : vector<16x128xf32>
    %c1_i32 = arith.constant 1 : i32
    %48 = tpu.dynamic_rotate %47 by %c1_i32 dim 0 : vector<16x128xf32>, i32 -> vector<16x128xf32>
    %49 = tpu.iota {dimensions = array<i32: 0>} : vector<16x1xi32>
    %c4_i32 = arith.constant 4 : i32
    %c0_i32 = arith.constant 0 : i32
    %50 = arith.cmpi eq, %c4_i32, %c0_i32 : i32
    %c1_i32_32 = arith.constant 1 : i32
    %51 = arith.select %50, %c1_i32_32, %c4_i32 : i32
    %52 = vector.broadcast %51 : i32 to vector<16x1xi32>
    %53 = arith.remsi %49, %52 : vector<16x1xi32>
    %c0_i32_33 = arith.constant 0 : i32
    %54 = vector.broadcast %c0_i32_33 : i32 to vector<16x1xi32>
    %55 = arith.cmpi ne, %53, %54 : vector<16x1xi32>
    %c0_i32_34 = arith.constant 0 : i32
    %56 = vector.broadcast %c0_i32_34 : i32 to vector<16x1xi32>
    %57 = arith.cmpi slt, %53, %56 : vector<16x1xi32>
    %c0_i32_35 = arith.constant 0 : i32
    %58 = arith.cmpi slt, %51, %c0_i32_35 : i32
    %59 = vector.broadcast %58 : i1 to vector<16x1xi1>
    %60 = vector.broadcast %59 : vector<16x1xi1> to vector<16x1xi1>
    %61 = arith.xori %57, %60 : vector<16x1xi1>
    %62 = arith.andi %61, %55 : vector<16x1xi1>
    %63 = vector.broadcast %51 : i32 to vector<16x1xi32>
    %64 = arith.addi %53, %63 : vector<16x1xi32>
    %65 = arith.select %62, %64, %53 : vector<16x1xi1>, vector<16x1xi32>
    %c0_i32_36 = arith.constant 0 : i32
    %66 = vector.broadcast %c0_i32_36 : i32 to vector<16x1xi32>
    %67 = arith.cmpi eq, %65, %66 : vector<16x1xi32>
    %cst_37 = arith.constant 0.000000e+00 : f32
    %68 = vector.shape_cast %67 : vector<16x1xi1> to vector<16x1xi1>
    %69 = vector.broadcast %68 : vector<16x1xi1> to vector<16x128xi1>
    %70 = vector.broadcast %cst_37 : f32 to vector<16x128xf32>
    %71 = arith.select %69, %70, %48 : vector<16x128xi1>, vector<16x128xf32>
    %72 = arith.maximumf %24, %47 : vector<16x128xf32>
    %73 = arith.maximumf %72, %71 : vector<16x128xf32>
    %74 = arith.truncf %73 : vector<16x128xf32> to vector<16x128xbf16>
    %c0_38 = arith.constant 0 : index
    %c0_39 = arith.constant 0 : index
    %c0_40 = arith.constant 0 : index
    %75 = vector.load %arg10[%c0_38, %c0_39, %c0_40] : memref<1x16x128xbf16, #tpu.memory_space<vmem>>, vector<1x16x128xbf16>
    %76 = vector.shape_cast %75 : vector<1x16x128xbf16> to vector<16x128xbf16>
    %77 = vector.shape_cast %74 : vector<16x128xbf16> to vector<1x16x128xbf16>
    tpu.vector_store %arg10[%c0_38, %c0_39, %c0_40], %77 {strides = array<i32>} : memref<1x16x128xbf16, #tpu.memory_space<vmem>>, vector<1x16x128xbf16>,
    return
  }
  func.func @transform_0(%arg0: i32, %arg1: i32) -> (i32, i32, i32) {
    %c0_i32 = arith.constant 0 : i32
    %c0_i32_0 = arith.constant 0 : i32
    return %arg0, %arg1, %c0_i32 : i32, i32, i32
  }
  func.func @transform_1(%arg0: i32, %arg1: i32) -> (i32, i32, i32) {
    %c0_i32 = arith.constant 0 : i32
    %c0_i32_0 = arith.constant 0 : i32
    return %arg0, %arg1, %c0_i32 : i32, i32, i32
  }
  func.func @transform_2(%arg0: i32, %arg1: i32) -> (i32, i32, i32) {
    %c0_i32 = arith.constant 0 : i32
    %c0_i32_0 = arith.constant 0 : i32
    return %arg0, %arg1, %c0_i32 : i32, i32, i32
  }
  func.func @transform_3(%arg0: i32, %arg1: i32) -> (i32, i32, i32) {
    %c0_i32 = arith.constant 0 : i32
    %c0_i32_0 = arith.constant 0 : i32
    return %arg0, %arg1, %c0_i32 : i32, i32, i32
  }
  func.func @transform_4(%arg0: i32, %arg1: i32) -> (i32, i32, i32) {
    %c0_i32 = arith.constant 0 : i32
    %c0_i32_0 = arith.constant 0 : i32
    return %arg0, %arg1, %c0_i32 : i32, i32, i32
  }
  func.func @transform_5(%arg0: i32, %arg1: i32) -> (i32, i32, i32) {
    %c0_i32 = arith.constant 0 : i32
    %c0_i32_0 = arith.constant 0 : i32
    return %arg0, %arg1, %c0_i32 : i32, i32, i32
  }
  func.func @transform_6(%arg0: i32, %arg1: i32) -> (i32, i32) {
    %c0_i32 = arith.constant 0 : i32
    %c0_i32_0 = arith.constant 0 : i32
    %c0_i32_1 = arith.constant 0 : i32
    return %c0_i32, %c0_i32_0 : i32, i32
  }
  func.func @transform_7(%arg0: i32, %arg1: i32) -> (i32, i32) {
    %c0_i32 = arith.constant 0 : i32
    %c0_i32_0 = arith.constant 0 : i32
    %c0_i32_1 = arith.constant 0 : i32
    return %c0_i32, %c0_i32_0 : i32, i32
  }
  func.func @transform_8(%arg0: i32, %arg1: i32) -> (i32, i32, i32) {
    %c0_i32 = arith.constant 0 : i32
    %c0_i32_0 = arith.constant 0 : i32
    return %arg0, %arg1, %c0_i32 : i32, i32, i32
  }
}

</mosaic_0001>

<bundles_post_ra>
// kernel: downsampler_forward.1
= control target key start
LH: loop header
LB: loop body
LE: loop exit
PB: predicated region body
PF: predicated region fallthrough
CT: control target
= control target key end

     0   :  { %s1425_s27 = smov 0   ;;  %s1427_s28 = smov 0   ;;  %s1680_s0 = inlined_call_operand.vmem [shape: bf16[2,16,147], index: 0, kind: input, shape index: {}]   ;;  %s1681_s1 = inlined_call_operand.vmem [shape: bf16[2,16,147], index: 1, kind: input, shape index: {}]   ;;  %s1682_s2 = inlined_call_operand.vmem [shape: bf16[2,16,147], index: 2, kind: input, shape index: {}]   ;;  %s1683_s3 = inlined_call_operand.vmem [shape: bf16[2,16,147], index: 3, kind: input, shape index: {}]   ;;  %s1684_s4 = inlined_call_operand.vmem [shape: bf16[2,16,147], index: 4, kind: input, shape index: {}]   ;;  %s1685_s5 = inlined_call_operand.vmem [shape: bf16[2,16,147], index: 5, kind: input, shape index: {}]   ;;  %s1686_s6 = inlined_call_operand.vmem [shape: bf16[147,128], index: 6, kind: input, shape index: {}]   ;;  %s1687_s7 = inlined_call_operand.vmem [shape: f32[1,128], index: 7, kind: input, shape index: {}]   ;;  %s1688_s8 = inlined_call_operand.vmem [shape: bf16[2,16,128], index: 8, kind: output, shape index: {}]  }
   0x1   :  { %s1429_s29 = smov 0  }
   0x2 LB: > { %s30_s30 = sadd.s32 1, %s1372_s28  ;;  %p1238_p0 = scmp.ge.s32.totalorder %s1376_s29, 1  ;;  %s1376_s29 = sphi %s1429_s29, %s18_s29   ;;  %s1372_s28 = sphi %s1427_s28, %s1690_s28   ;;  %s1368_s27 = sphi %s1425_s27, %s1689_s27  }
   0x3   : > { %p32_p1 = scmp.ge.s32.totalorder %s30_s30, 2  ;;  %p374_p2 = scmp.lt.s32.totalorder %s1376_s29, 3 }
   0x5   : > { %s1692_s30 = smov (%p32_p1, %s30_s30), 0  ;;  %p375_p3 = pnand %p1238_p0, %p374_p2 }
   0x6   : > { %p468_p4 = scmp.lt.s32.totalorder (!%p375_p3), %s1368_s27, 1 }
   0x7   : > { %378 = sbr.rel (%p375_p3) target bundleno = 347 (0x15b), region = 52 }
   0xc   : > { %v1446_v0 = vld [vmem:[%s1686_s6 + $0x38] sm:$0xff]   ;;  %v1378_v1 = vmov 0   ;;  %v1455_v2 = vld [vmem:[%s1686_s6 + $0x30] sm:$0xff]   ;;  %v1464_v3 = vld [vmem:[%s1686_s6 + $0x28] sm:$0xff]   ;;  %s1694_s27 = smov (!%p468_p4, %s1368_s27), 1  ;;  %vm638_vm0 = vcmask 154624   ;;  %v987_v54 = vlaneseq }
   0xd   : > { %649 = vmatprep.subr.bf16.mxu0 %v1378_v1  ;;  %706 = vmatprep.subr.bf16.mxu1 %v1378_v1  ;;  %v1475_v4 = vld [vmem:[%s1686_s6 + $0x20] sm:$0xff]   ;;  %s1286_s17 = sshll.u32 %s1694_s27, 4  ;;  %v1493_v5 = vld [vmem:[%s1686_s6 + $0x18] sm:$0xff]   ;;  %v1523_v8 = vld [vmem:[%s1686_s6 + $0x10] sm:$0xff]   ;;  %vm642_vm1 = vcmask 1040384   ;;  %vm643_vm2 = vcmask 1041408  }
   0xe   : > { %650 = vmatpush1.bf16.msra.mxu0 %v1446_v0  ;;  %707 = vmatpush1.bf16.msra.mxu1 %v1446_v0  ;;  %s1483_s20 = scalar_lea.vmem %s1680_s0, %s1286_s17  ;;  %s1488_s23 = scalar_lea.vmem %s1684_s4, %s1286_s17  ;;  %v1537_v9 = vld [vmem:[%s1686_s6 + $0x8] sm:$0xff]   ;;  %v1379_v10 = vmov 65535   ;;  %v1546_v12 = vld [vmem:[%s1686_s6] sm:$0xff]   ;;  %v988_v58 = vshrl.u32 %v987_v54, 7 }
   0xf   : > { %651 = vmatprep.subr.bf16.mxu0 %v1378_v1  ;;  %708 = vmatprep.subr.bf16.mxu1 %v1378_v1  ;;  %v1338_v6 = vld [vmem:[%s1483_s20 + $0x4] ss:$8 sps:$4 sm:$0xff]   ;;  %s1501_s10 = scalar_lea.vmem %s1682_s2, %s1286_s17  ;;  %s1509_s13 = scalar_lea.vmem %s1681_s1, %s1286_s17  ;;  %v644_v11 = vsel %vm642_vm1, 4294967295, %v1379_v10  ;;  %v1334_v13 = vld [vmem:[%s1686_s6 + $0x48] ss:$0 sps:$4 sm:$0x33]  }
  0x10   : > { %v1341_v7 = vld [vmem:[%s1488_s23 + $0x4] ss:$8 sps:$4 sm:$0xff]   ;;  %1266 = vmatprep.mubr.msk.bf16.mxu0 %vm638_vm0, %v1338_v6  ;;  %s1516_s16 = scalar_lea.vmem %s1685_s5, %s1286_s17  ;;  %s1528_s24 = scalar_lea.vmem %s1683_s3, %s1286_s17  ;;  %v645_v14 = vsel %vm643_vm2, %v644_v11, 0  ;;  %v1336_v17 = vld [vmem:[%s1483_s20] ss:$8 sps:$4 sm:$0xff]   ;;  %v992_v6 = vadd.s32 8, %v988_v58 }
  0x11   : > { %1269 = vmatprep.mubr.msk.bf16.mxu1 %vm638_vm0, %v1341_v7  ;;  %v1555_v15 = vand.u32 %v1334_v13, %v645_v14  ;;  %v1564_v16 = vld [vmem:[%s1686_s6 + $0x40] sm:$0xff]   ;;  %vm989_vm3 = vcmp.lt.s32.totalorder %v988_v58, 1 }
  0x12   : > { %652 = vmatpush1.bf16.msra.mxu0 %v1455_v2  ;;  %709 = vmatpush1.bf16.msra.mxu1 %v1455_v2  ;;  %v1339_v18 = vld [vmem:[%s1488_s23] ss:$8 sps:$4 sm:$0xff]   ;;  %v1342_v19 = vld [vmem:[%s1501_s10 + $0x4] ss:$8 sps:$4 sm:$0xff]  }
  0x13   : > { %653 = vmatprep.subr.bf16.mxu0 %v1378_v1  ;;  %710 = vmatprep.subr.bf16.mxu1 %v1378_v1  ;;  %v1344_v20 = vld [vmem:[%s1509_s13 + $0x4] ss:$8 sps:$4 sm:$0xff]   ;;  %v1346_v21 = vld [vmem:[%s1501_s10] ss:$8 sps:$4 sm:$0xff]   ;;  %s1292_s10 = sshll.u32 %s1694_s27, 3 }
  0x14   : > { %v1347_v22 = vld [vmem:[%s1509_s13] ss:$8 sps:$4 sm:$0xff]   ;;  %v1348_v23 = vld [vmem:[%s1516_s16 + $0x4] ss:$8 sps:$4 sm:$0xff]   ;;  %s541_s18 = scalar_lea.vmem %s1688_s8, %s1292_s10 }
  0x15   : > { %v1350_v24 = vld [vmem:[%s1528_s24 + $0x4] ss:$8 sps:$4 sm:$0xff]   ;;  %v1352_v25 = vld [vmem:[%s1516_s16] ss:$8 sps:$4 sm:$0xff]  }
  0x16   : > { %654 = vmatpush1.bf16.msra.mxu0 %v1464_v3  ;;  %711 = vmatpush1.bf16.msra.mxu1 %v1464_v3  ;;  %v1353_v26 = vld [vmem:[%s1528_s24] ss:$8 sps:$4 sm:$0xff]  }
  0x17   : > { %655 = vmatprep.subr.bf16.mxu0 %v1378_v1  ;;  %712 = vmatprep.subr.bf16.mxu1 %v1378_v1  ;;  %v1253_v27 = vld [vmem:[%s1687_s7] ss:$0 sm:$0xff] }
  0x1a   : > { %656 = vmatpush1.bf16.msra.mxu0 %v1475_v4  ;;  %713 = vmatpush1.bf16.msra.mxu1 %v1475_v4 }
  0x1b   : > { %657 = vmatprep.subr.bf16.mxu0 %v1378_v1  ;;  %714 = vmatprep.subr.bf16.mxu1 %v1378_v1 }
  0x1e   : > { %658 = vmatpush1.bf16.msra.mxu0 %v1493_v5  ;;  %715 = vmatpush1.bf16.msra.mxu1 %v1493_v5 }
  0x1f   : > { %659 = vmatprep.subr.bf16.mxu0 %v1378_v1  ;;  %716 = vmatprep.subr.bf16.mxu1 %v1378_v1 }
  0x22   : > { %660 = vmatpush1.bf16.msra.mxu0 %v1523_v8  ;;  %717 = vmatpush1.bf16.msra.mxu1 %v1523_v8 }
  0x23   : > { %661 = vmatprep.subr.bf16.mxu0 %v1378_v1  ;;  %718 = vmatprep.subr.bf16.mxu1 %v1378_v1 }
  0x26   : > { %662 = vmatpush1.bf16.msra.mxu0 %v1537_v9  ;;  %719 = vmatpush1.bf16.msra.mxu1 %v1537_v9 }
  0x27   : > { %663 = vmatprep.subr.bf16.mxu0 %v1378_v1  ;;  %720 = vmatprep.subr.bf16.mxu1 %v1378_v1 }
  0x2a   : > { %664 = vmatpush1.bf16.msra.mxu0 %v1546_v12  ;;  %721 = vmatpush1.bf16.msra.mxu1 %v1546_v12 }
  0x2b   : > { %677 = vmatprep.subr.bf16.mxu0 %v1378_v1  ;;  %734 = vmatprep.subr.bf16.mxu1 %v1378_v1 }
  0x2e   : > { %678 = vmatpush2.bf16.msra.mxu0 %v1555_v15  ;;  %735 = vmatpush2.bf16.msra.mxu1 %v1555_v15 }
  0x2f   : > { %679 = vmatprep.subr.bf16.mxu0 %v1378_v1  ;;  %736 = vmatprep.subr.bf16.mxu1 %v1378_v1 }
  0x32   : > { %680 = vmatpush2.bf16.msra.mxu0 %v1564_v16  ;;  %737 = vmatpush2.bf16.msra.mxu1 %v1564_v16 }
  0x33   : > { %765 = vmatprep.subr.bf16.mxu0 %v1378_v1  ;;  %824 = vmatprep.subr.bf16.mxu1 %v1378_v1 }
  0x35   : > { %682 = vmatmul.mubr.bf16.vlgmr.msra.gmra.mxu0 %v1336_v17  ;;  %739 = vmatmul.mubr.bf16.vlgmr.msra.gmra.mxu1 %v1339_v18  ;;  %v1004_v17 = vand.u32 3, %v992_v6 }
  0x36   : > { %766 = vmatpush1.bf16.msra.mxu0 %v1446_v0  ;;  %825 = vmatpush1.bf16.msra.mxu1 %v1446_v0 }
  0x37   : > { %767 = vmatprep.subr.bf16.mxu0 %v1378_v1  ;;  %826 = vmatprep.subr.bf16.mxu1 %v1378_v1  ;;  %vm1018_vm5 = vcmp.eq.s32.totalorder %v1004_v17, 0 }
  0x38   : > { %1272 = vmatprep.mubr.msk.bf16.mxu0 %vm638_vm0, %v1342_v19  ;;  %1275 = vmatprep.mubr.msk.bf16.mxu1 %vm638_vm0, %v1344_v20 }
  0x3a   : > { %768 = vmatpush1.bf16.msra.mxu0 %v1455_v2  ;;  %827 = vmatpush1.bf16.msra.mxu1 %v1455_v2 }
  0x3b   : > { %769 = vmatprep.subr.bf16.mxu0 %v1378_v1  ;;  %828 = vmatprep.subr.bf16.mxu1 %v1378_v1 }
  0x3e   : > { %770 = vmatpush1.bf16.msra.mxu0 %v1464_v3  ;;  %829 = vmatpush1.bf16.msra.mxu1 %v1464_v3 }
  0x3f   : > { %771 = vmatprep.subr.bf16.mxu0 %v1378_v1  ;;  %830 = vmatprep.subr.bf16.mxu1 %v1378_v1 }
  0x42   : > { %772 = vmatpush1.bf16.msra.mxu0 %v1475_v4  ;;  %831 = vmatpush1.bf16.msra.mxu1 %v1475_v4 }
  0x43   : > { %773 = vmatprep.subr.bf16.mxu0 %v1378_v1  ;;  %832 = vmatprep.subr.bf16.mxu1 %v1378_v1 }
  0x46   : > { %774 = vmatpush1.bf16.msra.mxu0 %v1493_v5  ;;  %833 = vmatpush1.bf16.msra.mxu1 %v1493_v5 }
  0x47   : > { %775 = vmatprep.subr.bf16.mxu0 %v1378_v1  ;;  %834 = vmatprep.subr.bf16.mxu1 %v1378_v1 }
  0x4a   : > { %776 = vmatpush1.bf16.msra.mxu0 %v1523_v8  ;;  %835 = vmatpush1.bf16.msra.mxu1 %v1523_v8 }
  0x4b   : > { %777 = vmatprep.subr.bf16.mxu0 %v1378_v1  ;;  %836 = vmatprep.subr.bf16.mxu1 %v1378_v1 }
  0x4e   : > { %778 = vmatpush1.bf16.msra.mxu0 %v1537_v9  ;;  %837 = vmatpush1.bf16.msra.mxu1 %v1537_v9 }
  0x4f   : > { %779 = vmatprep.subr.bf16.mxu0 %v1378_v1  ;;  %838 = vmatprep.subr.bf16.mxu1 %v1378_v1 }
  0x52   : > { %780 = vmatpush1.bf16.msra.mxu0 %v1546_v12  ;;  %839 = vmatpush1.bf16.msra.mxu1 %v1546_v12 }
  0x53   : > { %793 = vmatprep.subr.bf16.mxu0 %v1378_v1  ;;  %852 = vmatprep.subr.bf16.mxu1 %v1378_v1 }
  0x56   : > { %794 = vmatpush2.bf16.msra.mxu0 %v1555_v15  ;;  %853 = vmatpush2.bf16.msra.mxu1 %v1555_v15 }
  0x57   : > { %795 = vmatprep.subr.bf16.mxu0 %v1378_v1  ;;  %854 = vmatprep.subr.bf16.mxu1 %v1378_v1 }
  0x5a   : > { %796 = vmatpush2.bf16.msra.mxu0 %v1564_v16  ;;  %855 = vmatpush2.bf16.msra.mxu1 %v1564_v16 }
  0x5b   : > { %881 = vmatprep.subr.bf16.mxu0 %v1378_v1  ;;  %940 = vmatprep.subr.bf16.mxu1 %v1378_v1 }
  0x5d   : > { %798 = vmatmul.mubr.bf16.vlgmr.msra.gmra.mxu0 %v1346_v21  ;;  %857 = vmatmul.mubr.bf16.vlgmr.msra.gmra.mxu1 %v1347_v22 }
  0x5e   : > { %882 = vmatpush1.bf16.msra.mxu0 %v1446_v0  ;;  %941 = vmatpush1.bf16.msra.mxu1 %v1446_v0 }
  0x5f   : > { %883 = vmatprep.subr.bf16.mxu0 %v1378_v1  ;;  %942 = vmatprep.subr.bf16.mxu1 %v1378_v1 }
  0x60   : > { %1278 = vmatprep.mubr.msk.bf16.mxu0 %vm638_vm0, %v1348_v23  ;;  %1281 = vmatprep.mubr.msk.bf16.mxu1 %vm638_vm0, %v1350_v24 }
  0x62   : > { %884 = vmatpush1.bf16.msra.mxu0 %v1455_v2  ;;  %943 = vmatpush1.bf16.msra.mxu1 %v1455_v2 }
  0x63   : > { %885 = vmatprep.subr.bf16.mxu0 %v1378_v1  ;;  %944 = vmatprep.subr.bf16.mxu1 %v1378_v1 }
  0x66   : > { %886 = vmatpush1.bf16.msra.mxu0 %v1464_v3  ;;  %945 = vmatpush1.bf16.msra.mxu1 %v1464_v3 }
  0x67   : > { %887 = vmatprep.subr.bf16.mxu0 %v1378_v1  ;;  %946 = vmatprep.subr.bf16.mxu1 %v1378_v1 }
  0x6a   : > { %888 = vmatpush1.bf16.msra.mxu0 %v1475_v4  ;;  %947 = vmatpush1.bf16.msra.mxu1 %v1475_v4 }
  0x6b   : > { %889 = vmatprep.subr.bf16.mxu0 %v1378_v1  ;;  %948 = vmatprep.subr.bf16.mxu1 %v1378_v1 }
  0x6e   : > { %890 = vmatpush1.bf16.msra.mxu0 %v1493_v5  ;;  %949 = vmatpush1.bf16.msra.mxu1 %v1493_v5 }
  0x6f   : > { %891 = vmatprep.subr.bf16.mxu0 %v1378_v1  ;;  %950 = vmatprep.subr.bf16.mxu1 %v1378_v1 }
  0x72   : > { %892 = vmatpush1.bf16.msra.mxu0 %v1523_v8  ;;  %951 = vmatpush1.bf16.msra.mxu1 %v1523_v8 }
  0x73   : > { %893 = vmatprep.subr.bf16.mxu0 %v1378_v1  ;;  %952 = vmatprep.subr.bf16.mxu1 %v1378_v1 }
  0x76   : > { %894 = vmatpush1.bf16.msra.mxu0 %v1537_v9  ;;  %953 = vmatpush1.bf16.msra.mxu1 %v1537_v9 }
  0x77   : > { %895 = vmatprep.subr.bf16.mxu0 %v1378_v1  ;;  %954 = vmatprep.subr.bf16.mxu1 %v1378_v1 }
  0x7a   : > { %896 = vmatpush1.bf16.msra.mxu0 %v1546_v12  ;;  %955 = vmatpush1.bf16.msra.mxu1 %v1546_v12 }
  0x7b   : > { %909 = vmatprep.subr.bf16.mxu0 %v1378_v1  ;;  %968 = vmatprep.subr.bf16.mxu1 %v1378_v1 }
  0x7e   : > { %910 = vmatpush2.bf16.msra.mxu0 %v1555_v15  ;;  %969 = vmatpush2.bf16.msra.mxu1 %v1555_v15 }
  0x7f   : > { %911 = vmatprep.subr.bf16.mxu0 %v1378_v1  ;;  %970 = vmatprep.subr.bf16.mxu1 %v1378_v1 }
  0x82   : > { %912 = vmatpush2.bf16.msra.mxu0 %v1564_v16  ;;  %971 = vmatpush2.bf16.msra.mxu1 %v1564_v16  ;;  %v997_v16 = vand.u32 3, %v988_v58 }
  0x84   : > { %vm1017_vm4 = vcmp.eq.s32.totalorder %v997_v16, 0 }
  0x85   : > { %914 = vmatmul.mubr.bf16.vlgmr.msra.gmra.mxu0 %v1352_v25  ;;  %973 = vmatmul.mubr.bf16.vlgmr.msra.gmra.mxu1 %v1353_v26 }
  0xf5   : > { %v683_v28 = vpop.f32.mrf.mxu0  ;;  %v740_v29 = vpop.f32.mrf.mxu1 }
  0xf6   : > { %v684_v30 = vadd.f32 %v1253_v27, %v683_v28  ;;  %v741_v31 = vadd.f32 %v1253_v27, %v740_v29 }
  0xf7   : > { %v685_v32 = vpop.f32.mrf.mxu0  ;;  %v742_v33 = vpop.f32.mrf.mxu1 }
  0xf8   : > { %v690_v34 = vmax.f32 %v684_v30, 0.0  ;;  %v747_v35 = vmax.f32 %v741_v31, 0.0 }
  0xf9   : > { %v686_v36 = vpop.f32.mrf.mxu0  ;;  %v743_v37 = vpop.f32.mrf.mxu1 }
  0xfa   : > { %v749_v38 = vmax.f32 %v690_v34, %v747_v35  ;;  %v687_v39 = vadd.f32 %v1253_v27, %v686_v36  ;;  %v744_v40 = vadd.f32 %v1253_v27, %v743_v37 }
  0xfb   : > { %v688_v41 = vpop.f32.mrf.mxu0  ;;  %v745_v42 = vpop.f32.mrf.mxu1 }
  0xfc   : > { %v691_v43 = vmax.f32 %v687_v39, 0.0  ;;  %v748_v44 = vmax.f32 %v744_v40, 0.0 }
  0xfe   : > { %v750_v45 = vmax.f32 %v691_v43, %v748_v44 }
 0x11d   : > { %v799_v46 = vpop.f32.mrf.mxu0  ;;  %v858_v47 = vpop.f32.mrf.mxu1 }
 0x11e   : > { %v859_v55 = vadd.f32 %v1253_v27, %v858_v47  ;;  %v800_v2 = vadd.f32 %v1253_v27, %v799_v46 }
 0x11f   : > { %v801_v48 = vpop.f32.mrf.mxu0  ;;  %v860_v49 = vpop.f32.mrf.mxu1 }
 0x120   : > { %v865_v63 = vmax.f32 %v859_v55, 0.0  ;;  %v806_v15 = vmax.f32 %v800_v2, 0.0 }
 0x121   : > { %v802_v50 = vpop.f32.mrf.mxu0  ;;  %v861_v51 = vpop.f32.mrf.mxu1 }
 0x122   : > { %v862_v0 = vadd.f32 %v1253_v27, %v861_v51  ;;  %v803_v3 = vadd.f32 %v1253_v27, %v802_v50  ;;  %v808_v23 = vmax.f32 %v749_v38, %v806_v15 }
 0x123   : > { %v804_v52 = vpop.f32.mrf.mxu0  ;;  %v863_v53 = vpop.f32.mrf.mxu1 }
 0x124   : > { %v866_v13 = vmax.f32 %v862_v0, 0.0  ;;  %v807_v18 = vmax.f32 %v803_v3, 0.0 }
 0x126   : > { %v809_v24 = vmax.f32 %v750_v45, %v807_v18 }
 0x145   : > { %v915_v56 = vpop.f32.mrf.mxu0  ;;  %v974_v57 = vpop.f32.mrf.mxu1 }
 0x146   : > { %v916_v59 = vadd.f32 %v1253_v27, %v915_v56  ;;  %v975_v60 = vadd.f32 %v1253_v27, %v974_v57 }
 0x147   : > { %v917_v61 = vpop.f32.mrf.mxu0  ;;  %v976_v62 = vpop.f32.mrf.mxu1 }
 0x148   : > { %v922_v1 = vmax.f32 %v916_v59, 0.0  ;;  %v981_v8 = vmax.f32 %v975_v60, 0.0 }
 0x149   : > { %v918_v4 = vpop.f32.mrf.mxu0  ;;  %v977_v5 = vpop.f32.mrf.mxu1 }
 0x14a   : > { %v924_v7 = vmax.f32 %v865_v63, %v922_v1  ;;  %v919_v9 = vadd.f32 %v1253_v27, %v918_v4  ;;  %v978_v10 = vadd.f32 %v1253_v27, %v977_v5 }
 0x14b   : > { %v920_v11 = vpop.f32.mrf.mxu0  ;;  %v979_v12 = vpop.f32.mrf.mxu1 }
 0x14c   : > { %v923_v14 = vmax.f32 %v919_v9, 0.0  ;;  %v983_v19 = vmax.f32 %v924_v7, %v981_v8  ;;  %v982_v21 = vmax.f32 %v978_v10, 0.0 }
 0x14e   : > { %v925_v20 = vmax.f32 %v866_v13, %v923_v14  ;;  %v985_v25 = vrot.slane %v983_v19, 7  ;;  %v1025_v27 = vmax.f32 %v808_v23, %v983_v19 }
 0x150   : > { %v984_v22 = vmax.f32 %v925_v20, %v982_v21 }
 0x152   : > { %v986_v26 = vrot.slane %v984_v22, 7  ;;  %v1026_v30 = vmax.f32 %v809_v24, %v984_v22 }
 0x154   : > { %v990_v28 = vsel %vm989_vm3, %v985_v25, %v986_v26  ;;  %v991_v29 = vsel %vm989_vm3, %v986_v26, %v985_v25 }
 0x155   : > { %v1023_v31 = vsel %vm1017_vm4, 0.0, %v991_v29  ;;  %v1024_v32 = vsel %vm1018_vm5, 0.0, %v990_v28 }
 0x156   : > { %v1027_v33 = vmax.f32 %v1025_v27, %v1023_v31  ;;  %v1028_v34 = vmax.f32 %v1026_v30, %v1024_v32 }
 0x158   : > { %v1298_v35 = vpack.c.bf16 %v1028_v34, %v1027_v33 }
 0x15a   : > { %1299 = vst [vmem:[%s541_s18] sm:$0xff] %v1298_v35  }
 0x15b PF: > { %s18_s29 = sadd.s32 1, %s1376_s29   ;;  %s1689_s27 = smov %s1372_s28 }
 0x15c   : > { %p15_p5 = scmp.ge.s32.totalorder %s18_s29, 4   ;;  %s1690_s28 = smov %s1692_s30 }
 0x15e   :  { %17 = sbr.rel (!%p15_p5) target bundleno = 2 (0x2), region = 97 }

</bundles_post_ra>
